<compile_context>
chip_gen: v7x
topology: tpu7x:2x2x1
jax: 0.10.0
libtpu: 0.0.40
codegen_flags: <defaults>
</compile_context>

<pallas_src>
import jax
import jax.numpy as jnp
from jax.experimental import pallas as pl
from jax.experimental.pallas import tpu as pltpu

LANE = 128
MAX_TILE_ROWS = 1024   # (1024, 128) f32 tile = 512 KiB per input per buffer
NUM_PARALLEL = 2       # leading "parallel" grid axis (both TCs on v7x)


def _dice_bce_kernel(x_ref, t_ref, out_ref):
    i = pl.program_id(1)

    # Output block index depends only on the parallel axis, so it stays
    # resident in VMEM across the inner (reduction) axis -> accumulate into it.
    @pl.when(i == 0)
    def _():
        out_ref[...] = jnp.zeros_like(out_ref)

    # Inputs stay in their native dtype in HBM; cast to f32 in-register.
    x = x_ref[...].astype(jnp.float32)
    t = t_ref[...].astype(jnp.float32)

    # torch F.binary_cross_entropy clamps log terms at -100.  Clamp BEFORE any
    # multiply so padded zeros cannot produce 0 * (-inf) NaNs.
    log_x = jnp.maximum(jnp.log(x), -100.0)
    log_1mx = jnp.maximum(jnp.log(1.0 - x), -100.0)
    # -(t*log_x + (1-t)*log_1mx) == -(log_1mx + t*(log_x - log_1mx))
    bce_elem = -(log_1mx + t * (log_x - log_1mx))

    # Lane-wise partial sums: reduce only over the sublane axis here; the
    # 128-way cross-lane reduce happens once, in the wrapper.
    partials = jnp.concatenate(
        [
            jnp.sum(x * t, axis=0, keepdims=True),   # intersection
            jnp.sum(x, axis=0, keepdims=True),       # sum(x)
            jnp.sum(t, axis=0, keepdims=True),       # sum(t)
            jnp.sum(bce_elem, axis=0, keepdims=True),  # BCE sum
        ],
        axis=0,
    )  # (4, LANE)
    out_ref[...] += partials.reshape(1, 4, LANE)


def dice_bce_loss(inputs, targets, smooth=1.0):
    # Keep native dtype (no f32 upcast in HBM); kernel casts in-register.
    x = inputs.reshape(-1)
    t = targets.reshape(-1)
    n = x.shape[0]

    rows = pl.cdiv(n, LANE)
    # Tile rows: as large as possible (up to MAX_TILE_ROWS), multiple of 8,
    # shrinking for tiny inputs so we don't over-pad.
    tile_rows = min(
        MAX_TILE_ROWS,
        max(8, ((pl.cdiv(rows, NUM_PARALLEL) + 7) // 8) * 8),
    )
    tiles_per_slice = pl.cdiv(rows, NUM_PARALLEL * tile_rows)
    rows_pad = NUM_PARALLEL * tiles_per_slice * tile_rows
    n_pad = rows_pad * LANE
    if n_pad != n:
        # Zero padding contributes nothing: x=0, t=0 => x*t = x = t = 0 and
        # BCE term = -(log(1-0) + 0*(...)) = 0 (clamped logs stay finite).
        # Only the mean divisor (original n) matters, handled below.
        x = jnp.pad(x, (0, n_pad - n))
        t = jnp.pad(t, (0, n_pad - n))

    x2 = x.reshape(rows_pad, LANE)
    t2 = t.reshape(rows_pad, LANE)

    partials = pl.pallas_call(
        _dice_bce_kernel,
        out_shape=jax.ShapeDtypeStruct((NUM_PARALLEL, 4, LANE), jnp.float32),
        grid_spec=pltpu.PrefetchScalarGridSpec(
            num_scalar_prefetch=0,
            grid=(NUM_PARALLEL, tiles_per_slice),
            in_specs=[
                pl.BlockSpec(
                    (tile_rows, LANE),
                    lambda p, i: (p * tiles_per_slice + i, 0),
                ),
                pl.BlockSpec(
                    (tile_rows, LANE),
                    lambda p, i: (p * tiles_per_slice + i, 0),
                ),
            ],
            out_specs=pl.BlockSpec((1, 4, LANE), lambda p, i: (p, 0, 0)),
        ),
        compiler_params=pltpu.CompilerParams(
            dimension_semantics=("parallel", "arbitrary"),
        ),
    )(x2, t2)

    # Final cross-lane / cross-core reduce + scalar combine (tiny).
    sums = jnp.sum(partials, axis=(0, 2))  # [intersection, sum_x, sum_t, bce_sum]
    intersection, sum_x, sum_t, bce_sum = sums[0], sums[1], sums[2], sums[3]
    bce = bce_sum / n  # reduction='mean' over the original N elements
    dice = 1.0 - (2.0 * intersection + smooth) / (sum_x + sum_t + smooth)
    # TODO(synk): original module prints BCE/DICE; host-side print of device
    # scalars dropped per perf feedback (values are available here if needed).
    return bce + dice


def _dice_bce_ref(inputs, targets, smooth=1.0):
    x = inputs.reshape(-1).astype(jnp.float32)
    t = targets.reshape(-1).astype(jnp.float32)
    inter = jnp.sum(x * t)
    dice = 1.0 - (2.0 * inter + smooth) / (jnp.sum(x) + jnp.sum(t) + smooth)
    log_x = jnp.maximum(jnp.log(x), -100.0)
    log_1mx = jnp.maximum(jnp.log(1.0 - x), -100.0)
    bce = jnp.mean(-(t * log_x + (1.0 - t) * log_1mx))
    return bce + dice


if __name__ == "__main__":
    key = jax.random.PRNGKey(0)
    k1, k2 = jax.random.split(key)
    B, C, H, W = 2, 4, 16, 16
    # inputs are probabilities (as expected by F.binary_cross_entropy)
    inputs = jax.nn.sigmoid(jax.random.normal(k1, (B, C, H, W), jnp.float32))
    targets = jax.random.bernoulli(k2, 0.5, (B, C, H, W)).astype(jnp.float32)

    loss = dice_bce_loss(inputs, targets, smooth=1.0)
    jax.block_until_ready(loss)

    ref = _dice_bce_ref(inputs, targets, smooth=1.0)
    assert jnp.allclose(loss, ref, rtol=1e-4, atol=1e-4), (loss, ref)
    print("KERNEL_OK")
</pallas_src>

<mosaic_0001>
module attributes {stable_mosaic.version = 11 : i64} {
  func.func @_dice_bce_kernel(%arg0: i32, %arg1: i32, %arg2: memref<8x128xf32, #tpu.memory_space<vmem>>, %arg3: memref<8x128xf32, #tpu.memory_space<vmem>>, %arg4: memref<1x4x128xf32, #tpu.memory_space<vmem>>) attributes {dimension_semantics = [#tpu.dimension_semantics<parallel>, #tpu.dimension_semantics<arbitrary>], iteration_bounds = array<i64: 2, 1>, scalar_prefetch = 0 : i64, scratch_operands = 0 : i64, tpu.core_type = #tpu.core_type<tc>, window_params = [{transform_indices = @transform_0, window_bounds = array<i64: 8, 128>}, {transform_indices = @transform_1, window_bounds = array<i64: 8, 128>}, {transform_indices = @transform_2, window_bounds = array<i64: 1, 4, 128>}]} {
    %c0_i32 = arith.constant 0 : i32
    %0 = arith.cmpi eq, %arg1, %c0_i32 : i32
    %1 = arith.extui %0 : i1 to i32
    %c0_i32_0 = arith.constant 0 : i32
    %2 = arith.cmpi ne, %1, %c0_i32_0 : i32
    scf.if %2 {
      %cst_17 = arith.constant 0.000000e+00 : f32
      %32 = vector.broadcast %cst_17 : f32 to vector<1x4x128xf32>
      %c0_18 = arith.constant 0 : index
      %c0_19 = arith.constant 0 : index
      %c0_20 = arith.constant 0 : index
      %33 = vector.load %arg4[%c0_18, %c0_19, %c0_20] : memref<1x4x128xf32, #tpu.memory_space<vmem>>, vector<1x4x128xf32>
      tpu.vector_store %arg4[%c0_18, %c0_19, %c0_20], %32 {strides = array<i32>} : memref<1x4x128xf32, #tpu.memory_space<vmem>>, vector<1x4x128xf32>,
    } else {
    }
    %c0 = arith.constant 0 : index
    %c0_1 = arith.constant 0 : index
    %3 = vector.load %arg2[%c0, %c0_1] : memref<8x128xf32, #tpu.memory_space<vmem>>, vector<8x128xf32>
    %c0_2 = arith.constant 0 : index
    %c0_3 = arith.constant 0 : index
    %4 = vector.load %arg3[%c0_2, %c0_3] : memref<8x128xf32, #tpu.memory_space<vmem>>, vector<8x128xf32>
    %5 = math.log %3 : vector<8x128xf32>
    %cst = arith.constant -1.000000e+02 : f32
    %6 = vector.broadcast %cst : f32 to vector<8x128xf32>
    %7 = arith.maximumf %5, %6 : vector<8x128xf32>
    %cst_4 = arith.constant 1.000000e+00 : f32
    %8 = vector.broadcast %cst_4 : f32 to vector<8x128xf32>
    %9 = arith.subf %8, %3 : vector<8x128xf32>
    %10 = math.log %9 : vector<8x128xf32>
    %cst_5 = arith.constant -1.000000e+02 : f32
    %11 = vector.broadcast %cst_5 : f32 to vector<8x128xf32>
    %12 = arith.maximumf %10, %11 : vector<8x128xf32>
    %13 = arith.subf %7, %12 : vector<8x128xf32>
    %14 = arith.mulf %4, %13 : vector<8x128xf32>
    %15 = arith.addf %12, %14 : vector<8x128xf32>
    %cst_6 = arith.constant 0.000000e+00 : f32
    %16 = vector.broadcast %cst_6 : f32 to vector<8x128xf32>
    %17 = arith.subf %16, %15 : vector<8x128xf32>
    %18 = arith.mulf %3, %4 : vector<8x128xf32>
    %cst_7 = arith.constant dense<0.000000e+00> : vector<128xf32>
    %19 = vector.multi_reduction <add>, %18, %cst_7 [0] : vector<8x128xf32> to vector<128xf32>
    %20 = vector.shape_cast %19 : vector<128xf32> to vector<1x128xf32>
    %cst_8 = arith.constant dense<0.000000e+00> : vector<128xf32>
    %21 = vector.multi_reduction <add>, %3, %cst_8 [0] : vector<8x128xf32> to vector<128xf32>
    %22 = vector.shape_cast %21 : vector<128xf32> to vector<1x128xf32>
    %cst_9 = arith.constant dense<0.000000e+00> : vector<128xf32>
    %23 = vector.multi_reduction <add>, %4, %cst_9 [0] : vector<8x128xf32> to vector<128xf32>
    %24 = vector.shape_cast %23 : vector<128xf32> to vector<1x128xf32>
    %cst_10 = arith.constant dense<0.000000e+00> : vector<128xf32>
    %25 = vector.multi_reduction <add>, %17, %cst_10 [0] : vector<8x128xf32> to vector<128xf32>
    %26 = vector.shape_cast %25 : vector<128xf32> to vector<1x128xf32>
    %27 = tpu.concatenate %20, %22, %24, %26 in 0 : vector<1x128xf32>, vector<1x128xf32>, vector<1x128xf32>, vector<1x128xf32> -> vector<4x128xf32>
    %c0_11 = arith.constant 0 : index
    %c0_12 = arith.constant 0 : index
    %c0_13 = arith.constant 0 : index
    %28 = vector.load %arg4[%c0_11, %c0_12, %c0_13] : memref<1x4x128xf32, #tpu.memory_space<vmem>>, vector<1x4x128xf32>
    %29 = vector.shape_cast %27 : vector<4x128xf32> to vector<1x4x128xf32>
    %30 = arith.addf %28, %29 : vector<1x4x128xf32>
    %c0_14 = arith.constant 0 : index
    %c0_15 = arith.constant 0 : index
    %c0_16 = arith.constant 0 : index
    %31 = vector.load %arg4[%c0_14, %c0_15, %c0_16] : memref<1x4x128xf32, #tpu.memory_space<vmem>>, vector<1x4x128xf32>
    tpu.vector_store %arg4[%c0_14, %c0_15, %c0_16], %30 {strides = array<i32>} : memref<1x4x128xf32, #tpu.memory_space<vmem>>, vector<1x4x128xf32>,
    return
  }
  func.func @transform_0(%arg0: i32, %arg1: i32) -> (i32, i32) {
    %c1_i32 = arith.constant 1 : i32
    %0 = arith.muli %arg0, %c1_i32 : i32
    %1 = arith.addi %0, %arg1 : i32
    %c0_i32 = arith.constant 0 : i32
    %c0_i32_0 = arith.constant 0 : i32
    return %1, %c0_i32 : i32, i32
  }
  func.func @transform_1(%arg0: i32, %arg1: i32) -> (i32, i32) {
    %c1_i32 = arith.constant 1 : i32
    %0 = arith.muli %arg0, %c1_i32 : i32
    %1 = arith.addi %0, %arg1 : i32
    %c0_i32 = arith.constant 0 : i32
    %c0_i32_0 = arith.constant 0 : i32
    return %1, %c0_i32 : i32, i32
  }
  func.func @transform_2(%arg0: i32, %arg1: i32) -> (i32, i32, i32) {
    %c0_i32 = arith.constant 0 : i32
    %c0_i32_0 = arith.constant 0 : i32
    %c0_i32_1 = arith.constant 0 : i32
    return %arg0, %c0_i32, %c0_i32_0 : i32, i32, i32
  }
}

</mosaic_0001>

<bundles_post_ra>
// kernel: tpu_custom_call.1
= control target key start
LH: loop header
LB: loop body
LE: loop exit
PB: predicated region body
PF: predicated region fallthrough
CT: control target
= control target key end

     0   :  { %7 = vsyncpa [#allocation3], 0  ;;  %s867_s0 = inlined_call_operand.hbm [shape: f32[16,128], index: 0, kind: input, shape index: {}]   ;;  %s868_s1 = inlined_call_operand.hbm [shape: f32[16,128], index: 1, kind: input, shape index: {}]   ;;  %s869_s2 = inlined_call_operand.hbm [shape: f32[2,4,128], index: 2, kind: output, shape index: {}]  }
   0x1   :  { %9 = vsyncpa [#allocation3 + $0x1], 0 }
   0x2   :  { %10 = vsyncpa [#allocation6], 0 }
   0x3   :  { %12 = vsyncpa [#allocation6 + $0x1], 0 }
   0x4   :  { %13 = vsyncpa [#allocation4], 0 }
   0x5   :  { %15 = vsyncpa [#allocation4 + $0x1], 0  ;;  %s640_s9 = smov 0   ;;  %s642_s10 = smov 0  }
   0x6   :  { %s644_s11 = smov 0   ;;  %s646_s12 = smov 0  }
   0x7   :  { %s648_s13 = smov 0   ;;  %s650_s14 = smov 0  }
   0x8 LB: > { %s385_s15 = sadd.s32 4294967295, %s619_s14   ;;  %s386_s16 = sadd.s32 4294967294, %s619_s14   ;;  %s619_s14 = sphi %s650_s14, %s21_s14   ;;  %s615_s13 = sphi %s648_s13, %s889_s13   ;;  %s611_s12 = sphi %s646_s12, %s888_s12   ;;  %s607_s11 = sphi %s644_s11, %s887_s11   ;;  %s603_s10 = sphi %s642_s10, %s886_s10   ;;  %s599_s9 = sphi %s640_s9, %s885_s9  }
   0x9   : > { %s33_s17 = sadd.s32 1, %s615_s13  ;;  %s42_s18 = sadd.s32 1, %s607_s11 }
   0xa   : > { %p35_p0 = scmp.ge.s32.totalorder %s33_s17, 2  ;;  %p49_p1 = scmp.ne.s32.totalorder %s607_s11, %s603_s10 }
   0xb   : > { %p50_p2 = scmp.eq.s32.totalorder %s619_s14, 0  ;;  %p55_p3 = scmp.ne.s32.totalorder %s603_s10, %s599_s9 }
   0xc   : > { %s891_s17 = smov (%p35_p0, %s33_s17), 0  ;;  %p56_p5 = scmp.eq.s32.totalorder %s385_s15, 0 }
   0xd   : > { %p681_p4 = por %p50_p2, %p49_p1  ;;  %s39_s20 = ssub.s32 %s615_s13, %s891_s17 }
   0xe   : > { %p107_p6 = scmp.eq.s32.totalorder %s385_s15, 1  ;;  %p40_p7 = scmp.eq.s32.totalorder %s39_s20, 0 }
   0xf   : > { %p687_p8 = por %p56_p5, %p55_p3  ;;  %p113_p10 = scmp.eq.s32.totalorder %s386_s16, 1 }
  0x10   : > { %p691_p9 = por %p107_p6, %p49_p1  ;;  %p418_p13 = scmp.lt.s32.totalorder %s619_s14, 2 }
  0x11   : > { %s873_s21 = scalar_select %p687_p8, 1, 0 }
  0x12   : > { %s874_s22 = scalar_select %p691_p9, 1, 0 }
  0x13   : > { %s696_s23 = scalar_select %p40_p7, %s607_s11, %s42_s18  }
  0x14   : > { %p698_p11 = por %p113_p10, %p55_p3  ;;  %s705_s25 = sand.u32 1, %s607_s11  }
  0x15   : > { %s389_s26 = sshll.u32 %s705_s25, 3  ;;  %s390_s27 = sshll.u32 %s615_s13, 7 }
  0x16   : > { %s875_s24 = scalar_select %p698_p11, 1, 0 }
  0x17   : > { %s714_s30 = scalar_lea.hbm %s867_s0, %s390_s27  ;;  %s137_s3 = scalar_lea.vmem [#allocation2], %s389_s26 }
  0x18   : > { %s145_s4 = sshll.u32 %s137_s3, 4  ;;  %p722_p0 = pnand %p418_p13, %p681_p4  ;;  %s718_s4 = int_to_ptr.vmem [resolvable:$true] %s145_s4 }
  0x19   : > { %s134_s6 = scalar_lea.sflag [#allocation3], %s705_s25  ;;  %s473_s7 = scalar_lea.hbm %s714_s30, 128 }
  0x1a   : > { %p474_p3 = scmp.ne.s32.totalorder %s714_s30, %s473_s7  ;;  %p475_p5 = pneg %p722_p0 }
  0x1b   : > { %s478_s16 = scalar_lea.hbm %s867_s0, 256  ;;  %p479_p4 = scmp.lt.u32.totalorder %s714_s30, %s867_s0 }
  0x1c   : > { %p476_p6 = pnand %p475_p5, %p474_p3  ;;  %p480_p10 = scmp.lt.u32.totalorder %s478_s16, %s473_s7 }
  0x1d   : > { %p482_p12 = scmp.lt.u32.totalorder %s473_s7, %s714_s30 }
  0x1e   : > { %p477_p7 = pneg %p476_p6  ;;  %p481_p13 = por %p480_p10, %p479_p4 }
  0x20   : > { %p483_p1 = por %p482_p12, %p481_p13 }
  0x22   : > { %p484_p2 = pnand %p483_p1, %p477_p7 }
  0x24   : > { %487 = shalt.err (!%p484_p2)
}
  0x25   : > { %s488_s20 = scalar_lea.vmem %s718_s4, 128  ;;  %s621_s28 = smov [#allocation2]  }
  0x26   : > { %p489_p3 = scmp.ne.s32.totalorder %s718_s4, %s488_s20  ;;  %s493_s29 = sshll.u32 %s621_s28, 4  ;;  %s494_s29 = int_to_ptr.vmem [resolvable:$false] %s493_s29 }
  0x27   : > { %s495_s3 = scalar_lea.vmem %s494_s29, 256  ;;  %p496_p9 = scmp.lt.s32.totalorder %s718_s4, %s494_s29 }
  0x28   : > { %p491_p6 = pnand %p489_p3, %p475_p5  ;;  %p497_p4 = scmp.lt.s32.totalorder %s495_s3, %s488_s20 }
  0x2a   : > { %p492_p11 = pneg %p491_p6  ;;  %p498_p10 = por %p497_p4, %p496_p9 }
  0x2c   : > { %p499_p12 = pnand %p498_p10, %p492_p11 }
  0x2e   : > { %502 = shalt.err (!%p499_p12)
}
  0x2f   : > { %410 = dma.hbm_to_vmem [thread:$0]  (!%p722_p0), %s714_s30, 128, %s718_s4, %s134_s6  }
  0x30   : > { %p877_p1 = scmp.lt.s32.totalorder %s619_s14, 3  ;;  %p878_p2 = scmp.ge.s32.totalorder %s619_s14, 1 }
  0x31   : > { %s767_s16 = scalar_lea.hbm %s868_s1, %s390_s27  ;;  %s156_s18 = scalar_lea.vmem [#allocation5], %s389_s26 }
  0x32   : > { %p758_p7 = pnand %p878_p2, %p877_p1  ;;  %s164_s19 = sshll.u32 %s156_s18, 4  ;;  %s165_s19 = int_to_ptr.vmem [resolvable:$true] %s164_s19 }
  0x33   : > { %s153_s30 = scalar_lea.sflag [#allocation6], %s705_s25  ;;  %s503_s4 = scalar_lea.hbm %s767_s16, 128 }
  0x34   : > { %s879_s7 = scalar_select %p758_p7, 1, 0 }
  0x35   : > { %p504_p9 = scmp.ne.s32.totalorder %s767_s16, %s503_s4  ;;  %s508_s27 = scalar_lea.hbm %s868_s1, 256 }
  0x36   : > { %p509_p3 = scmp.lt.u32.totalorder %s767_s16, %s868_s1  ;;  %p510_p6 = scmp.lt.u32.totalorder %s508_s27, %s503_s4 }
  0x37   : > { %p506_p11 = pnand %p504_p9, %p475_p5  ;;  %p512_p10 = scmp.lt.u32.totalorder %s503_s4, %s767_s16 }
  0x38   : > { %p511_p4 = por %p510_p6, %p509_p3 }
  0x39   : > { %p507_p13 = pneg %p506_p11 }
  0x3a   : > { %p513_p12 = por %p512_p10, %p511_p4 }
  0x3c   : > { %p514_p1 = pnand %p513_p12, %p507_p13 }
  0x3e   : > { %517 = shalt.err (!%p514_p1)
}
  0x3f   : > { %s518_s25 = scalar_lea.vmem %s165_s19, 128  ;;  %s622_s26 = smov [#allocation5]  }
  0x40   : > { %p519_p2 = scmp.ne.s32.totalorder %s165_s19, %s518_s25  ;;  %s523_s3 = sshll.u32 %s622_s26, 4  ;;  %s524_s3 = int_to_ptr.vmem [resolvable:$false] %s523_s3 }
  0x41   : > { %s525_s8 = scalar_lea.vmem %s524_s3, 256  ;;  %p526_p8 = scmp.lt.s32.totalorder %s165_s19, %s524_s3 }
  0x42   : > { %p521_p9 = pnand %p519_p2, %p475_p5  ;;  %p527_p7 = scmp.lt.s32.totalorder %s525_s8, %s518_s25 }
  0x44   : > { %p522_p11 = pneg %p521_p9  ;;  %p528_p3 = por %p527_p7, %p526_p8 }
  0x46   : > { %p529_p6 = pnand %p528_p3, %p522_p11 }
  0x48   : > { %532 = shalt.err (!%p529_p6)
}
  0x49   : > { %413 = dma.hbm_to_vmem [thread:$0]  (!%p722_p0), %s767_s16, 128, %s165_s19, %s153_s30  }
  0x4a   : > { %p880_p13 = scmp.ne.s32.totalorder %s879_s7, 0 }
  0x4b   : > { %s794_s15 = sand.u32 (!%p880_p13), 1, %s603_s10   ;;  %p881_p5 = scmp.ne.s32.totalorder (!%p880_p13), %s873_s21, 0 }
  0x4c   : > { %173 = sbr.rel (%p880_p13) target bundleno = 141 (0x8d), region = 28  ;;  %s394_s18 = sshll.u32 (!%p880_p13), %s794_s15, 3 }
  0x4d   : > { %s176_s4 = scalar_lea.sflag (!%p880_p13), [#allocation3], %s794_s15  ;;  %s179_s6 = scalar_lea.vmem (!%p880_p13), [#allocation2], %s394_s18 }
  0x53   : > { %586 = dma.done.wait (%p881_p5), %s176_s4, 128  }
  0x54   : > { %588 = vsyncadd (%p881_p5), %s176_s4, 4294967168  ;;  %s185_s5 = scalar_lea.sflag [#allocation6], %s794_s15  ;;  %s188_s16 = scalar_lea.vmem [#allocation5], %s394_s18 }
  0x55   : > { %590 = dma.done.wait (%p881_p5), %s185_s5, 128  }
  0x56   : > { %592 = vsyncadd (%p881_p5), %s185_s5, 4294967168  ;;  %s396_s7 = sshll.u32 %s794_s15, 2  ;;  %v623_v0 = vmov 0.0   ;;  %v221_v1 = vld [vmem:[%s179_s6] sm:$0xff]  ;;  %v222_v3 = vld [vmem:[%s188_s16] sm:$0xff]  ;;  %vm259_vm0 = vcmask 1040384  }
  0x57   : > { %s808_s19 = scalar_lea.vmem [#allocation7], %s396_s7  ;;  %469 = vlog2.f32 %v221_v1  ;;  %v226_v2 = vsub.f32 1.0, %v221_v1  ;;  %v234_v4 = vmul.f32 %v222_v3, %v221_v1  ;;  %v241_v6 = vrot.slane %v221_v1, 4  ;;  %s398_s21 = sshll.u32 %s611_s12, 6 }
  0x58   : > { %220 = vst [vmem:[%s808_s19] sm:$0xf] %v623_v0  ;;  %v247_v8 = vrot.slane %v222_v3, 4  ;;  %vm261_vm1 = vcmask 1041408   ;;  %vm263_vm2 = vcmask 1042432   ;;  %s282_s30 = sshll.u32 %s808_s19, 4  ;;  %s817_s28 = scalar_lea.hbm %s869_s2, %s398_s21  ;;  %s819_s30 = int_to_ptr.vmem [resolvable:$true] %s282_s30 }
  0x59   : > { %471 = vlog2.f32 %v226_v2  ;;  %v235_v5 = vrot.slane %v234_v4, 4  ;;  %v242_v11 = vadd.f32 %v241_v6, %v221_v1  ;;  %s269_s29 = scalar_lea.sflag [#allocation4], %s794_s15  ;;  %s533_s25 = scalar_lea.vmem %s819_s30, 64 }
  0x5a   : > { %v248_v15 = vadd.f32 %v247_v8, %v222_v3  ;;  %p534_p8 = scmp.ne.s32.totalorder %s819_s30, %s533_s25  ;;  %p882_p0 = scmp.ne.s32.totalorder %s874_s22, 0 }
  0x5b   : > { %v236_v10 = vadd.f32 %v235_v5, %v234_v4  ;;  %v243_v18 = vrot.slane %v242_v11, 2  ;;  %s624_s12 = smov [#allocation7]  }
  0x5c   : > { %v249_v20 = vrot.slane %v248_v15, 2  ;;  %p535_p7 = pnand %p534_p8, %p882_p0  ;;  %s537_s26 = sshll.u32 %s624_s12, 4  ;;  %s538_s26 = int_to_ptr.vmem [resolvable:$false] %s537_s26 }
  0x5d   : > { %v237_v17 = vrot.slane %v236_v10, 2  ;;  %v244_v23 = vadd.f32 %v243_v18, %v242_v11  ;;  %s539_s3 = scalar_lea.vmem %s538_s26, 128  ;;  %p540_p10 = scmp.lt.s32.totalorder %s819_s30, %s538_s26 }
  0x5e   : > { %v250_v25 = vadd.f32 %v249_v20, %v248_v15  ;;  %p536_p4 = pneg %p535_p7  ;;  %p541_p12 = scmp.lt.s32.totalorder %s539_s3, %s533_s25 }
  0x5f   : > { %v238_v22 = vadd.f32 %v237_v17, %v236_v10  ;;  %v245_v28 = vrot.slane %v244_v23, 1  ;;  %v265_v41 = vld [vmem:[%s808_s19] sm:$0xf] }
  0x60   : > { %v251_v30 = vrot.slane %v250_v25, 1  ;;  %p542_p1 = por %p541_p12, %p540_p10 }
  0x61   : > { %v470_v7 = vpop.eup %469  ;;  %v239_v27 = vrot.slane %v238_v22, 1  ;;  %v246_v32 = vadd.f32 %v245_v28, %v244_v23 }
  0x62   : > { %v224_v9 = vmul.f32 0.6931472, %v470_v7  ;;  %v252_v35 = vadd.f32 %v251_v30, %v250_v25  ;;  %p543_p2 = pnand %p542_p1, %p536_p4 }
  0x63   : > { %v472_v12 = vpop.eup %471  ;;  %v240_v31 = vadd.f32 %v239_v27, %v238_v22 }
  0x64   : > { %v225_v13 = vmax.f32 %v224_v9, -100.0  ;;  %v228_v14 = vmul.f32 0.6931472, %v472_v12 }
  0x65   : > { %v260_v37 = vsel %vm259_vm0, %v240_v31, %v246_v32 }
  0x66   : > { %v229_v16 = vmax.f32 %v228_v14, -100.0  ;;  %v262_v39 = vsel %vm261_vm1, %v260_v37, %v252_v35 }
  0x68   : > { %v230_v19 = vsub.f32 %v225_v13, %v229_v16 }
  0x6a   : > { %v231_v21 = vmul.f32 %v230_v19, %v222_v3 }
  0x6c   : > { %v232_v24 = vadd.f32 %v231_v21, %v229_v16 }
  0x6e   : > { %v233_v26 = vsub.f32 0.0, %v232_v24 }
  0x70   : > { %v253_v29 = vrot.slane %v233_v26, 4 }
  0x72   : > { %v254_v33 = vadd.f32 %v253_v29, %v233_v26 }
  0x74   : > { %v255_v34 = vrot.slane %v254_v33, 2 }
  0x76   : > { %v256_v36 = vadd.f32 %v255_v34, %v254_v33 }
  0x78   : > { %v257_v38 = vrot.slane %v256_v36, 1 }
  0x7a   : > { %v258_v40 = vadd.f32 %v257_v38, %v256_v36 }
  0x7c   : > { %v264_v42 = vsel %vm263_vm2, %v262_v39, %v258_v40 }
  0x7d   : > { %v266_v43 = vadd.f32 %v265_v41, %v264_v42 }
  0x7f   : > { %267 = vst [vmem:[%s808_s19] sm:$0xf] %v266_v43 }
  0x80   : > { %546 = shalt.err (!%p543_p2)
}
  0x81   : > { %s547_s8 = scalar_lea.hbm %s817_s28, 64  ;;  %s551_s4 = scalar_lea.hbm %s869_s2, 128 }
  0x82   : > { %p548_p9 = scmp.ne.s32.totalorder %s817_s28, %s547_s8  ;;  %p552_p6 = scmp.lt.u32.totalorder %s817_s28, %s869_s2 }
  0x83   : > { %p553_p13 = scmp.lt.u32.totalorder %s551_s4, %s547_s8  ;;  %p555_p8 = scmp.lt.u32.totalorder %s547_s8, %s817_s28 }
  0x84   : > { %p549_p11 = pnand %p548_p9, %p882_p0 }
  0x85   : > { %p554_p5 = por %p553_p13, %p552_p6 }
  0x86   : > { %p550_p3 = pneg %p549_p11 }
  0x87   : > { %p556_p7 = por %p555_p8, %p554_p5 }
  0x89   : > { %p557_p4 = pnand %p556_p7, %p550_p3 }
  0x8b   : > { %560 = shalt.err (!%p557_p4)
}
  0x8c   : > { %405 = dma.vmem_to_hbm [thread:$0]  (%p882_p0), %s819_s30, 64, %s817_s28, %s269_s29  }
  0x8d PF: > { %s294_s16 = sand.u32 1, %s599_s9   ;;  %p883_p10 = scmp.ne.s32.totalorder %s875_s24, 0 }
  0x8e   : > { %p884_p12 = scmp.ge.s32.totalorder %s619_s14, 2  ;;  %s295_s7 = scalar_lea.sflag [#allocation4], %s294_s16 }
  0x90   : > { %p415_p1 = pnand %p884_p12, %p883_p10 }
  0x92   : > { %594 = dma.done.wait (!%p415_p1), %s295_s7, 64  }
  0x93   : > { %596 = vsyncadd (!%p415_p1), %s295_s7, 4294967232  ;;  %s21_s14 = sadd.s32 1, %s619_s14   ;;  %s885_s9 = smov %s603_s10 }
  0x94   : > { %p18_p2 = scmp.ge.s32.totalorder %s21_s14, 4   ;;  %s886_s10 = smov %s607_s11 }
  0x95   : > { %s887_s11 = smov %s696_s23  ;;  %s888_s12 = smov %s615_s13 }
  0x96   : > { %s889_s13 = smov %s891_s17  ;;  %20 = sbr.rel (!%p18_p2) target bundleno = 8 (0x8), region = 90 }
  0x9d   :  { %300 = vsyncpa [#allocation3], 1 }
  0x9e   :  { %302 = vsyncpa [#allocation3 + $0x1], 1 }
  0x9f   :  { %303 = vsyncpa [#allocation6], 1 }
  0xa0   :  { %305 = vsyncpa [#allocation6 + $0x1], 1 }
  0xa1   :  { %306 = vsyncpa [#allocation4], 1 }
  0xa2   :  { %308 = vsyncpa [#allocation4 + $0x1], 1 }

</bundles_post_ra>
